<compile_context>
chip_gen: v7x
topology: tpu7x:2x2x1
jax: 0.10.0
libtpu: 0.0.40
codegen_flags: <defaults>
</compile_context>

<pallas_src>
import functools
import math

import jax
import jax.numpy as jnp
from jax.experimental import pallas as pl
from jax.experimental.pallas import tpu as pltpu


def _round_up(n, m):
    return ((n + m - 1) // m) * m


def _layernorm_wide_kernel(x_ref, scale_ref, shift_ref, o_ref, *, eps):
    """Main path: the full emb_dim lives on the lane axis of the block."""
    x = x_ref[...].astype(jnp.float32)
    # Single-pass statistics: var = E[x^2] - mean^2 (unbiased=False).
    mean = jnp.mean(x, axis=-1, keepdims=True)                       # (rt, 1)
    mean_sq = jnp.mean(x * x, axis=-1, keepdims=True)                # (rt, 1)
    var = jnp.maximum(mean_sq - mean * mean, 0.0)
    # Matches the PyTorch module: divide by (sqrt(var) + eps), NOT sqrt(var+eps).
    inv = pl.reciprocal(jnp.sqrt(var) + eps, approx=False)
    out = (x - mean) * inv * scale_ref[...] + shift_ref[...]
    o_ref[...] = out.astype(o_ref.dtype)


def _layernorm_folded_kernel(x_ref, avg_ref, scale_ref, shift_ref, o_ref, *, eps):
    """Lane-dense path: each kernel row packs G = lane_width/emb_dim logical rows.

    avg_ref is a block-diagonal (lane_width, lane_width) averaging matrix, so
    (x @ avg) gives every lane the mean of its own emb_dim-wide group
    (segmented reduction on the MXU); loads/stores stay lane dense.
    """
    x = x_ref[...].astype(jnp.float32)
    avg = avg_ref[...]
    mean = jnp.dot(x, avg, preferred_element_type=jnp.float32)
    mean_sq = jnp.dot(x * x, avg, preferred_element_type=jnp.float32)
    var = jnp.maximum(mean_sq - mean * mean, 0.0)
    inv = pl.reciprocal(jnp.sqrt(var) + eps, approx=False)
    out = (x - mean) * inv * scale_ref[...] + shift_ref[...]
    o_ref[...] = out.astype(o_ref.dtype)


def _sublane_multiple(itemsize):
    # Packed-sublane minimum tile rows: 8 for 32-bit, 16 for bf16, 32 for i8/fp8.
    return max(8, 32 // max(int(itemsize), 1))


def _pick_row_tile(rows, lane_width, itemsize, target_tile_bytes, sublane_mult):
    """Pick the sublane (row) tile.

    Sized from actual DMA bytes so each grid step moves ~target_tile_bytes of
    HBM traffic (amortizing the ~0.35 us/step overhead), floored to the packed
    sublane multiple. When the row count allows, prefer >= 4 grid steps so the
    'parallel' axis load-balances across v7x's two TensorCores.
    """
    bytes_per_row = max(1, lane_width * int(itemsize))
    rt = (target_tile_bytes // bytes_per_row // sublane_mult) * sublane_mult
    rt = max(rt, sublane_mult)
    if rows >= 4 * sublane_mult:
        rt = min(rt, _round_up(pl.cdiv(rows, 4), sublane_mult))
    elif rows >= 2 * sublane_mult:
        rt = min(rt, _round_up(pl.cdiv(rows, 2), sublane_mult))
    else:
        rt = sublane_mult
    if rt > rows:
        rt = rows  # single block equal to the full row extent (always legal)
    return max(rt, 1)


def _vmem_need_bytes(rt, lane_width, itemsize, fold):
    """Conservative VMEM estimate: 2x-in + 2x-out double buffers (input dtype)
    plus ~3 full-tile f32 compute temps, params / averaging matrix, and slack."""
    tile_io = rt * lane_width * int(itemsize)
    tile_f32 = rt * lane_width * 4
    need = 4 * tile_io + 3 * tile_f32
    if fold:
        need += 2 * lane_width * lane_width * 4   # block-diagonal avg matrix
    need += 4 * lane_width * 4                    # scale / shift (f32)
    need += 4 << 20                               # compiler slack
    return need


def layer_norm(x, scale, shift, *, eps=1e-5, row_tile=None):
    """LayerNorm over the last axis of x (matches the PyTorch module).

    x:     (..., emb_dim)
    scale: (emb_dim,)
    shift: (emb_dim,)
    """
    orig_shape = x.shape
    emb_dim = orig_shape[-1]
    rows = 1
    for d in orig_shape[:-1]:
        rows *= d
    x2 = x.reshape(rows, emb_dim)

    # Hoist parameter casts out of the kernel (done once, not per grid step).
    scale_f = scale.astype(jnp.float32)
    shift_f = shift.astype(jnp.float32)

    itemsize = jnp.dtype(x.dtype).itemsize
    sublane_mult = _sublane_multiple(itemsize)

    # Generation-aware budgets (v7x: 64 MiB VMEM/TC -> ~4 MiB tiles, cap ~48 MiB;
    # v5e/v6e: 128 MiB -> ~8 MiB tiles, cap ~96 MiB).
    try:
        vmem_cap = int(pltpu.get_tpu_info().vmem_capacity_bytes)
    except Exception:
        vmem_cap = 64 << 20  # conservative default (v7x per-TensorCore VMEM)
    target_tile_bytes = max(2 << 20, min(8 << 20, vmem_cap // 16))
    vmem_budget = (vmem_cap * 3) // 4

    # Lane-dense folding: pack G logical rows per kernel row whenever emb_dim is
    # not a multiple of 128 and lcm(emb_dim, 128) stays small (unmasked stores).
    fold = False
    G = 1
    lane_width = emb_dim
    if emb_dim % 128 != 0:
        g = 128 // math.gcd(emb_dim, 128)   # lcm(emb_dim, 128) = emb_dim * g
        if emb_dim * g <= 512:
            fold = True
            G = g
            lane_width = emb_dim * g

    if fold:
        rows_g = _round_up(rows, G)
        if rows_g != rows:
            # Pad at most G-1 rows, only when rows % G != 0 (sliced off below).
            x2 = jnp.pad(x2, ((0, rows_g - rows), (0, 0)))
        n_rows = rows_g // G
        x_in = x2.reshape(n_rows, lane_width)
    else:
        rows_g = rows
        n_rows = rows
        x_in = x2

    if row_tile is None:
        rt = _pick_row_tile(n_rows, lane_width, itemsize, target_tile_bytes,
                            sublane_mult)
    else:
        rt = max(sublane_mult, (int(row_tile) // sublane_mult) * sublane_mult)
        if rt > n_rows:
            rt = n_rows

    # Shrink the tile (rare) if the conservative VMEM estimate would not fit.
    while rt > sublane_mult and _vmem_need_bytes(rt, lane_width, itemsize, fold) > vmem_budget:
        new_rt = ((rt // 2) // sublane_mult) * sublane_mult
        if new_rt <= 0 or new_rt == rt:
            break
        rt = new_rt

    # Ragged last block (n_rows % rt != 0) is handled by Pallas partial-block
    # masking: LayerNorm is row-independent, so the garbage rows of a partial
    # block only affect their own (discarded) output rows.
    grid = (pl.cdiv(n_rows, rt),)

    vmem_limit = int(min(max(_vmem_need_bytes(rt, lane_width, itemsize, fold),
                             32 << 20), vmem_budget))
    compiler_params = pltpu.CompilerParams(
        dimension_semantics=("parallel",),
        vmem_limit_bytes=vmem_limit,
    )

    if fold:
        scale_wide = jnp.tile(scale_f, G).reshape(1, lane_width)
        shift_wide = jnp.tile(shift_f, G).reshape(1, lane_width)
        # Block-diagonal averaging matrix: avg[i, j] = 1/emb_dim iff lanes i, j
        # belong to the same emb_dim-wide group.
        group = jnp.arange(lane_width, dtype=jnp.int32) // emb_dim
        avg = (group[:, None] == group[None, :]).astype(jnp.float32) / float(emb_dim)

        out = pl.pallas_call(
            functools.partial(_layernorm_folded_kernel, eps=eps),
            out_shape=jax.ShapeDtypeStruct((n_rows, lane_width), x.dtype),
            grid_spec=pltpu.PrefetchScalarGridSpec(
                num_scalar_prefetch=0,
                grid=grid,
                in_specs=[
                    pl.BlockSpec((rt, lane_width), lambda i: (i, 0)),
                    pl.BlockSpec((lane_width, lane_width), lambda i: (0, 0)),
                    pl.BlockSpec((1, lane_width), lambda i: (0, 0)),
                    pl.BlockSpec((1, lane_width), lambda i: (0, 0)),
                ],
                out_specs=pl.BlockSpec((rt, lane_width), lambda i: (i, 0)),
            ),
            compiler_params=compiler_params,
        )(x_in, avg, scale_wide, shift_wide)
        out2 = out.reshape(rows_g, emb_dim)
        if rows_g != rows:
            out2 = out2[:rows]
    else:
        scale_wide = scale_f.reshape(1, emb_dim)
        shift_wide = shift_f.reshape(1, emb_dim)
        out2 = pl.pallas_call(
            functools.partial(_layernorm_wide_kernel, eps=eps),
            out_shape=jax.ShapeDtypeStruct((n_rows, emb_dim), x.dtype),
            grid_spec=pltpu.PrefetchScalarGridSpec(
                num_scalar_prefetch=0,
                grid=grid,
                in_specs=[
                    pl.BlockSpec((rt, emb_dim), lambda i: (i, 0)),
                    pl.BlockSpec((1, emb_dim), lambda i: (0, 0)),
                    pl.BlockSpec((1, emb_dim), lambda i: (0, 0)),
                ],
                out_specs=pl.BlockSpec((rt, emb_dim), lambda i: (i, 0)),
            ),
            compiler_params=compiler_params,
        )(x_in, scale_wide, shift_wide)

    return out2.reshape(orig_shape)


if __name__ == "__main__":
    key = jax.random.PRNGKey(0)
    k0, k1, k2 = jax.random.split(key, 3)

    def _ref(x, scale, shift, eps=1e-5):
        mean = jnp.mean(x, axis=-1, keepdims=True)
        var = jnp.mean((x - mean) ** 2, axis=-1, keepdims=True)
        return scale * ((x - mean) / (jnp.sqrt(var) + eps)) + shift

    # --- 1) Small-emb_dim folded path (emb_dim divides 128): module-style shape.
    batch, seq, emb_dim = 2, 8, 32
    x = jax.random.normal(k0, (batch, seq, emb_dim), dtype=jnp.float32)
    shift = jnp.zeros((emb_dim,), dtype=jnp.float32)   # matches torch.zeros init
    scale = jnp.ones((emb_dim,), dtype=jnp.float32)    # matches torch.ones init
    out = jax.block_until_ready(layer_norm(x, scale, shift))
    assert out.shape == x.shape
    assert jnp.allclose(out, _ref(x, scale, shift), atol=3e-5, rtol=1e-5)

    # --- 2) Wide path with a ragged last row-block (rows=15, no pad/slice copies).
    b2, s2, d2 = 3, 5, 256
    x_w = jax.random.normal(k1, (b2, s2, d2), dtype=jnp.float32)
    scale_w = 1.0 + 0.1 * jax.random.normal(jax.random.PRNGKey(1), (d2,), jnp.float32)
    shift_w = 0.1 * jax.random.normal(jax.random.PRNGKey(2), (d2,), jnp.float32)
    out_w = jax.block_until_ready(layer_norm(x_w, scale_w, shift_w))
    assert out_w.shape == x_w.shape
    assert jnp.allclose(out_w, _ref(x_w, scale_w, shift_w), atol=3e-5, rtol=1e-5)

    # --- 3) Generalized fold (emb_dim=96 -> lane_width=384, G=4) with rows % G != 0.
    b3, s3, d3 = 2, 5, 96
    x_g = jax.random.normal(k2, (b3, s3, d3), dtype=jnp.float32)
    scale_g = 1.0 + 0.1 * jax.random.normal(jax.random.PRNGKey(3), (d3,), jnp.float32)
    shift_g = 0.1 * jax.random.normal(jax.random.PRNGKey(4), (d3,), jnp.float32)
    out_g = jax.block_until_ready(layer_norm(x_g, scale_g, shift_g))
    assert out_g.shape == x_g.shape
    assert jnp.allclose(out_g, _ref(x_g, scale_g, shift_g), atol=3e-5, rtol=1e-5)

    print("KERNEL_OK")
</pallas_src>

<mosaic_0001>
module attributes {stable_mosaic.version = 11 : i64} {
  func.func @_layernorm_folded_kernel(%arg0: i32, %arg1: memref<4x128xf32, #tpu.memory_space<vmem>>, %arg2: memref<128x128xf32, #tpu.memory_space<vmem>>, %arg3: memref<1x128xf32, #tpu.memory_space<vmem>>, %arg4: memref<1x128xf32, #tpu.memory_space<vmem>>, %arg5: memref<4x128xf32, #tpu.memory_space<vmem>>) attributes {dimension_semantics = [#tpu.dimension_semantics<parallel>], iteration_bounds = array<i64: 1>, scalar_prefetch = 0 : i64, scratch_operands = 0 : i64, tpu.core_type = #tpu.core_type<tc>, window_params = [{transform_indices = @transform_0, window_bounds = array<i64: 4, 128>}, {pipeline_mode = #tpu.pipeline_mode<synchronous>, transform_indices = @transform_1, window_bounds = array<i64: 128, 128>}, {pipeline_mode = #tpu.pipeline_mode<synchronous>, transform_indices = @transform_2, window_bounds = array<i64: 1, 128>}, {pipeline_mode = #tpu.pipeline_mode<synchronous>, transform_indices = @transform_3, window_bounds = array<i64: 1, 128>}, {transform_indices = @transform_4, window_bounds = array<i64: 4, 128>}]} {
    %c0 = arith.constant 0 : index
    %c0_0 = arith.constant 0 : index
    %0 = vector.load %arg1[%c0, %c0_0] : memref<4x128xf32, #tpu.memory_space<vmem>>, vector<4x128xf32>
    %c0_1 = arith.constant 0 : index
    %c0_2 = arith.constant 0 : index
    %1 = vector.load %arg2[%c0_1, %c0_2] : memref<128x128xf32, #tpu.memory_space<vmem>>, vector<128x128xf32>
    %cst = arith.constant dense<0.000000e+00> : vector<4x128xf32>
    %2 = tpu.matmul %0, %1, %cst {dimension_numbers = #tpu.dot_dimension_numbers<[1], [0], [0], [1], [0, 0, 1, 1], [], []>} : vector<4x128xf32>, vector<128x128xf32>, vector<4x128xf32> -> vector<4x128xf32>
    %3 = arith.mulf %0, %0 : vector<4x128xf32>
    %cst_3 = arith.constant dense<0.000000e+00> : vector<4x128xf32>
    %4 = tpu.matmul %3, %1, %cst_3 {dimension_numbers = #tpu.dot_dimension_numbers<[1], [0], [0], [1], [0, 0, 1, 1], [], []>} : vector<4x128xf32>, vector<128x128xf32>, vector<4x128xf32> -> vector<4x128xf32>
    %5 = arith.mulf %2, %2 : vector<4x128xf32>
    %6 = arith.subf %4, %5 : vector<4x128xf32>
    %cst_4 = arith.constant 0.000000e+00 : f32
    %7 = vector.broadcast %cst_4 : f32 to vector<4x128xf32>
    %8 = arith.maximumf %6, %7 : vector<4x128xf32>
    %9 = math.sqrt %8 : vector<4x128xf32>
    %cst_5 = arith.constant 9.99999974E-6 : f32
    %10 = vector.broadcast %cst_5 : f32 to vector<4x128xf32>
    %11 = arith.addf %9, %10 : vector<4x128xf32>
    %12 = tpu.reciprocal %11 : vector<4x128xf32> -> vector<4x128xf32>
    %13 = arith.subf %0, %2 : vector<4x128xf32>
    %14 = arith.mulf %13, %12 : vector<4x128xf32>
    %c0_6 = arith.constant 0 : index
    %c0_7 = arith.constant 0 : index
    %15 = vector.load %arg3[%c0_6, %c0_7] : memref<1x128xf32, #tpu.memory_space<vmem>>, vector<1x128xf32>
    %16 = vector.broadcast %15 : vector<1x128xf32> to vector<4x128xf32>
    %17 = arith.mulf %14, %16 : vector<4x128xf32>
    %c0_8 = arith.constant 0 : index
    %c0_9 = arith.constant 0 : index
    %18 = vector.load %arg4[%c0_8, %c0_9] : memref<1x128xf32, #tpu.memory_space<vmem>>, vector<1x128xf32>
    %19 = vector.broadcast %18 : vector<1x128xf32> to vector<4x128xf32>
    %20 = arith.addf %17, %19 : vector<4x128xf32>
    %c0_10 = arith.constant 0 : index
    %c0_11 = arith.constant 0 : index
    %21 = vector.load %arg5[%c0_10, %c0_11] : memref<4x128xf32, #tpu.memory_space<vmem>>, vector<4x128xf32>
    tpu.vector_store %arg5[%c0_10, %c0_11], %20 {strides = array<i32>} : memref<4x128xf32, #tpu.memory_space<vmem>>, vector<4x128xf32>,
    return
  }
  func.func @transform_0(%arg0: i32) -> (i32, i32) {
    %c0_i32 = arith.constant 0 : i32
    %c0_i32_0 = arith.constant 0 : i32
    return %arg0, %c0_i32 : i32, i32
  }
  func.func @transform_1(%arg0: i32) -> (i32, i32) {
    %c0_i32 = arith.constant 0 : i32
    %c0_i32_0 = arith.constant 0 : i32
    %c0_i32_1 = arith.constant 0 : i32
    return %c0_i32, %c0_i32_0 : i32, i32
  }
  func.func @transform_2(%arg0: i32) -> (i32, i32) {
    %c0_i32 = arith.constant 0 : i32
    %c0_i32_0 = arith.constant 0 : i32
    %c0_i32_1 = arith.constant 0 : i32
    return %c0_i32, %c0_i32_0 : i32, i32
  }
  func.func @transform_3(%arg0: i32) -> (i32, i32) {
    %c0_i32 = arith.constant 0 : i32
    %c0_i32_0 = arith.constant 0 : i32
    %c0_i32_1 = arith.constant 0 : i32
    return %c0_i32, %c0_i32_0 : i32, i32
  }
  func.func @transform_4(%arg0: i32) -> (i32, i32) {
    %c0_i32 = arith.constant 0 : i32
    %c0_i32_0 = arith.constant 0 : i32
    return %arg0, %c0_i32 : i32, i32
  }
}

</mosaic_0001>

<bundles_post_ra>
// kernel: tpu_custom_call.1
= control target key start
LH: loop header
LB: loop body
LE: loop exit
PB: predicated region body
PF: predicated region fallthrough
CT: control target
= control target key end

     0   :  { %9 = vsyncpa [#allocation3], 0  ;;  %s569_s0 = inlined_call_operand.hbm [shape: f32[4,128], index: 0, kind: input, shape index: {}]   ;;  %s570_s1 = inlined_call_operand.hbm [shape: f32[128,128], index: 1, kind: input, shape index: {}]   ;;  %s571_s2 = inlined_call_operand.vmem [shape: f32[1,128], index: 2, kind: input, shape index: {}]   ;;  %s572_s3 = inlined_call_operand.vmem [shape: f32[1,128], index: 3, kind: input, shape index: {}]   ;;  %s573_s4 = inlined_call_operand.hbm [shape: f32[4,128], index: 4, kind: output, shape index: {}]  }
   0x1   :  { %10 = vsyncpa [#allocation6], 0 }
   0x2   :  { %11 = vsyncpa [#allocation4], 0  ;;  %s487_s15 = smov [#allocation2]   ;;  %s488_s17 = smov [#allocation5]  }
   0x3   :  { %s18_s16 = sshll.u32 %s487_s15, 4  ;;  %s27_s18 = sshll.u32 %s488_s17, 4  ;;  %s19_s16 = int_to_ptr.vmem [resolvable:$true] %s18_s16  ;;  %s520_s18 = int_to_ptr.vmem [resolvable:$true] %s27_s18 }
   0x4   :  { %s415_s21 = scalar_lea.hbm %s569_s0, 64 }
   0x5   :  { %p416_p0 = scmp.ne.s32.totalorder %s569_s0, %s415_s21  ;;  %p419_p1 = scmp.lt.u32.totalorder %s415_s21, %s569_s0 }
   0x7   :  { %p421_p2 = pnand %p419_p1, %p416_p0 }
   0x9   :  { %424 = shalt.err (!%p421_p2)
}
   0xa   :  { %s425_s26 = scalar_lea.vmem %s19_s16, 64  ;;  %p430_p4 = scmp.lt.s32.totalorder %s19_s16, %s19_s16 }
   0xb   :  { %p426_p3 = scmp.ne.s32.totalorder %s19_s16, %s425_s26  ;;  %p431_p5 = scmp.lt.s32.totalorder %s425_s26, %s425_s26 }
   0xd   :  { %p432_p6 = por %p431_p5, %p430_p4 }
   0xf   :  { %p433_p7 = pnand %p432_p6, %p426_p3 }
  0x11   :  { %436 = shalt.err (!%p433_p7)
}
  0x12   :  { %21 = dma.hbm_to_vmem [thread:$0]  %s569_s0, 64, %s19_s16, [#allocation3]  }
  0x13   :  { %s437_s5 = scalar_lea.hbm %s570_s1, 2048 }
  0x14   :  { %p438_p8 = scmp.ne.s32.totalorder %s570_s1, %s437_s5  ;;  %p441_p9 = scmp.lt.u32.totalorder %s437_s5, %s570_s1 }
  0x16   :  { %p443_p10 = pnand %p441_p9, %p438_p8 }
  0x18   :  { %446 = shalt.err (!%p443_p10)
}
  0x19   :  { %s447_s10 = scalar_lea.vmem %s520_s18, 2048  ;;  %p452_p12 = scmp.lt.s32.totalorder %s520_s18, %s520_s18 }
  0x1a   :  { %p448_p11 = scmp.ne.s32.totalorder %s520_s18, %s447_s10  ;;  %p453_p13 = scmp.lt.s32.totalorder %s447_s10, %s447_s10 }
  0x1c   :  { %p454_p0 = por %p453_p13, %p452_p12 }
  0x1e   :  { %p455_p1 = pnand %p454_p0, %p448_p11 }
  0x20   :  { %458 = shalt.err (!%p455_p1)
}
  0x21   :  { %s489_s0 = smov 128   ;;  %s490_s11 = smov 8  }
  0x22   :  { %33 = dma.hbm_to_vmem [thread:$0]  %s570_s1, 2048, %s520_s18, [#allocation6], %s489_s0, %s489_s0, %s490_s11  }
  0x23   :  { %481 = dma.done.wait [#allocation3], 64  }
  0x24   :  { %482 = vsyncadd [#allocation3], 4294967232 }
  0x25   :  { %483 = dma.done.wait [#allocation6], 2048  }
  0x26   :  { %484 = vsyncadd [#allocation6], 4294965248  ;;  %v491_v0 = vmov 0.0|0.0   ;;  %vm492_vm0 = vmmov 0   ;;  %v493_v1 = vmov 0.0   ;;  %v45_v2 = vld [vmem:[#allocation5] sm:$0xff] }
  0x27   :  { %355 = vmatprep.subr.bf16.mxu0 %v491_v0  ;;  %379 = vmatprep.subr.bf16.mxu1 %v491_v0  ;;  %v46_v3 = vld [vmem:[#allocation5 + $0x8] sm:$0xff]  ;;  %v47_v4 = vld [vmem:[#allocation5 + $0x10] sm:$0xff]  ;;  %v48_v6 = vld [vmem:[#allocation5 + $0x18] sm:$0xff]  ;;  %s494_s17 = smov [#allocation7]  }
  0x28   :  { %317 = vmatprep.mubr.msk.f32.mxu0 %vm492_vm0, %v493_v1  ;;  %352 = vmatprep.mubr.msk.f32.mxu1 %vm492_vm0, %v493_v1  ;;  %v356_v5 = vpack.c.bf16 %v46_v3, %v45_v2  ;;  %v359_v7 = vpack.c.bf16 %v48_v6, %v47_v4  ;;  %v49_v8 = vld [vmem:[#allocation5 + $0x20] sm:$0xff]  ;;  %v50_v9 = vld [vmem:[#allocation5 + $0x28] sm:$0xff]  ;;  %v51_v11 = vld [vmem:[#allocation5 + $0x30] sm:$0xff]  ;;  %s239_s18 = sshll.u32 %s494_s17, 4  ;;  %s240_s18 = int_to_ptr.vmem [resolvable:$true] %s239_s18 }
  0x29   :  { %v362_v10 = vpack.c.bf16 %v50_v9, %v49_v8  ;;  %v52_v12 = vld [vmem:[#allocation5 + $0x38] sm:$0xff]  ;;  %v53_v14 = vld [vmem:[#allocation5 + $0x40] sm:$0xff]  ;;  %v54_v15 = vld [vmem:[#allocation5 + $0x48] sm:$0xff]  ;;  %s459_s19 = scalar_lea.vmem %s240_s18, 64  ;;  %p464_p3 = scmp.lt.s32.totalorder %s240_s18, %s240_s18 }
  0x2a   :  { %357 = vmatpush3.bf16.msra.mxu0 %v356_v5  ;;  %381 = vmatpush3.bf16.msra.mxu1 %v356_v5  ;;  %v365_v13 = vpack.c.bf16 %v52_v12, %v51_v11  ;;  %v368_v16 = vpack.c.bf16 %v54_v15, %v53_v14  ;;  %v55_v17 = vld [vmem:[#allocation5 + $0x50] sm:$0xff]  ;;  %v56_v18 = vld [vmem:[#allocation5 + $0x58] sm:$0xff]  ;;  %v57_v20 = vld [vmem:[#allocation5 + $0x60] sm:$0xff]  ;;  %p460_p2 = scmp.ne.s32.totalorder %s240_s18, %s459_s19  ;;  %p465_p4 = scmp.lt.s32.totalorder %s459_s19, %s459_s19 }
  0x2b   :  { %358 = vmatprep.subr.bf16.mxu0 %v491_v0  ;;  %382 = vmatprep.subr.bf16.mxu1 %v491_v0  ;;  %v371_v19 = vpack.c.bf16 %v56_v18, %v55_v17  ;;  %v58_v21 = vld [vmem:[#allocation5 + $0x68] sm:$0xff]  ;;  %v59_v23 = vld [vmem:[#allocation5 + $0x70] sm:$0xff]  ;;  %v60_v24 = vld [vmem:[#allocation5 + $0x78] sm:$0xff] }
  0x2c   :  { %v374_v22 = vpack.c.bf16 %v58_v21, %v57_v20  ;;  %v377_v25 = vpack.c.bf16 %v60_v24, %v59_v23  ;;  %v44_v26 = vld [vmem:[#allocation2] sm:$0xf]  ;;  %p466_p5 = por %p465_p4, %p464_p3 }
  0x2d   :  { %v131_v27 = vmul.f32 %v44_v26, %v44_v26  ;;  %v249_v43 = vld [vmem:[%s571_s2] ss:$0 sm:$0xff] }
  0x2e   :  { %360 = vmatpush3.bf16.msra.mxu0 %v359_v7  ;;  %384 = vmatpush3.bf16.msra.mxu1 %v359_v7  ;;  %v250_v45 = vld [vmem:[%s572_s3] ss:$0 sm:$0xff]  ;;  %p467_p6 = pnand %p466_p5, %p460_p2 }
  0x2f   :  { %361 = vmatprep.subr.bf16.mxu0 %v491_v0  ;;  %385 = vmatprep.subr.bf16.mxu1 %v491_v0 }
  0x32   :  { %363 = vmatpush3.bf16.msra.mxu0 %v362_v10  ;;  %387 = vmatpush3.bf16.msra.mxu1 %v362_v10 }
  0x33   :  { %364 = vmatprep.subr.bf16.mxu0 %v491_v0  ;;  %388 = vmatprep.subr.bf16.mxu1 %v491_v0 }
  0x36   :  { %366 = vmatpush3.bf16.msra.mxu0 %v365_v13  ;;  %390 = vmatpush3.bf16.msra.mxu1 %v365_v13 }
  0x37   :  { %367 = vmatprep.subr.bf16.mxu0 %v491_v0  ;;  %391 = vmatprep.subr.bf16.mxu1 %v491_v0 }
  0x3a   :  { %369 = vmatpush3.bf16.msra.mxu0 %v368_v16  ;;  %393 = vmatpush3.bf16.msra.mxu1 %v368_v16 }
  0x3b   :  { %370 = vmatprep.subr.bf16.mxu0 %v491_v0  ;;  %394 = vmatprep.subr.bf16.mxu1 %v491_v0 }
  0x3e   :  { %372 = vmatpush3.bf16.msra.mxu0 %v371_v19  ;;  %396 = vmatpush3.bf16.msra.mxu1 %v371_v19 }
  0x3f   :  { %373 = vmatprep.subr.bf16.mxu0 %v491_v0  ;;  %397 = vmatprep.subr.bf16.mxu1 %v491_v0 }
  0x42   :  { %375 = vmatpush3.bf16.msra.mxu0 %v374_v22  ;;  %399 = vmatpush3.bf16.msra.mxu1 %v374_v22 }
  0x43   :  { %376 = vmatprep.subr.bf16.mxu0 %v491_v0  ;;  %400 = vmatprep.subr.bf16.mxu1 %v491_v0 }
  0x46   :  { %378 = vmatpush3.bf16.msra.mxu0 %v377_v25  ;;  %402 = vmatpush3.bf16.msra.mxu1 %v377_v25 }
  0x49   :  { %318 = vmatmul.mubr.f32.vlgmr.msra.gmra.mrb[0].mxu0 %v44_v26  ;;  %353 = vmatmul.mubr.f32.vlgmr.msra.gmra.mrb[0].mxu1 %v131_v27 }
 0x11c   :  { %v127_v28 = vpop.f32.mrb[0].mxu0  ;;  %v198_v29 = vpop.f32.mrb[0].mxu1 }
 0x11d   :  { %v202_v30 = vmul.f32 %v127_v28, %v127_v28  ;;  %v319_v31 = vpop.f32.mrb[1].mxu0  ;;  %v354_v32 = vpop.f32.mrb[1].mxu1  ;;  %v214_v41 = vsub.f32 %v44_v26, %v127_v28 }
 0x11f   :  { %v203_v33 = vsub.f32 %v198_v29, %v202_v30 }
 0x121   :  { %v204_v34 = vmax.f32 %v203_v33, 0.0 }
 0x123   :  { %411 = vrsqrt.f32 %v204_v34  ;;  %vm207_vm1 = vcmp.eq.f32.partialorder %v204_v34, inf  ;;  %v210_v37 = vand.u32 2147483648, %v204_v34  ;;  %vm209_vm2 = vcmp.eq.f32.partialorder %v204_v34, 0.0 }
 0x12d   :  { %v412_v35 = vpop.eup %411 }
 0x12e   :  { %v206_v36 = vmul.f32 %v412_v35, %v204_v34 }
 0x130   :  { %v208_v38 = vsel %vm207_vm1, %v204_v34, %v206_v36 }
 0x131   :  { %v211_v39 = vsel %vm209_vm2, %v210_v37, %v208_v38 }
 0x132   :  { %v212_v40 = vadd.f32 1e-05, %v211_v39 }
 0x134   :  { %413 = vrcp.f32 %v212_v40 }
 0x13e   :  { %v414_v42 = vpop.eup %413 }
 0x13f   :  { %v215_v44 = vmul.f32 %v414_v42, %v214_v41 }
 0x141   :  { %v223_v46 = vmul.f32 %v249_v43, %v215_v44 }
 0x143   :  { %v231_v47 = vadd.f32 %v250_v45, %v223_v46 }
 0x145   :  { %232 = vst [vmem:[#allocation7] sm:$0xf] %v231_v47 }
 0x146   :  { %470 = shalt.err (!%p467_p6)
}
 0x147   :  { %s471_s21 = scalar_lea.hbm %s573_s4, 64 }
 0x148   :  { %p472_p7 = scmp.ne.s32.totalorder %s573_s4, %s471_s21  ;;  %p475_p8 = scmp.lt.u32.totalorder %s471_s21, %s573_s4 }
 0x14a   :  { %p477_p9 = pnand %p475_p8, %p472_p7 }
 0x14c   :  { %480 = shalt.err (!%p477_p9)
}
 0x14d   :  { %242 = dma.vmem_to_hbm [thread:$0]  %s240_s18, 64, %s573_s4, [#allocation4]  }
 0x14e   :  { %485 = dma.done.wait [#allocation4], 64  }
 0x14f   :  { %486 = vsyncadd [#allocation4], 4294967232 }
 0x150   :  { %246 = vsyncpa [#allocation3], 1 }
 0x151   :  { %247 = vsyncpa [#allocation6], 1 }
 0x152   :  { %248 = vsyncpa [#allocation4], 1 }

</bundles_post_ra>
